<compile_context>
chip_gen: v7x
topology: tpu7x:2x2x1
jax: 0.10.0
libtpu: 0.0.40
codegen_flags: <defaults>
</compile_context>

<pallas_src>
import functools

import jax
import jax.numpy as jnp
from jax.experimental import pallas as pl
from jax.experimental.pallas import tpu as pltpu


def _round_up(n, m):
    return ((n + m - 1) // m) * m


def ffn_kernel(x_ref, w1_ref, b1_ref, w2_ref, b2_ref, gamma_ref, beta_ref,
               o_ref, *, inv_d):
    # Load the row tile once; bf16 copy feeds the MXU, f32 copy is the residual.
    x = x_ref[...]                                               # (tm, d_pad)
    x_f32 = x.astype(jnp.float32)
    x_bf = x.astype(jnp.bfloat16)

    # w_1: Linear(d_in -> d_hid) + ReLU  (bf16 operands, f32 accumulation on the MXU).
    h = jnp.dot(x_bf, w1_ref[...], preferred_element_type=jnp.float32)
    h = jnp.maximum(h + b1_ref[...], 0.0)                        # (tm, h_pad)

    # w_2: Linear(d_hid -> d_in); dropout is identity in eval mode; residual add in f32.
    y = jnp.dot(h.astype(jnp.bfloat16), w2_ref[...],
                preferred_element_type=jnp.float32)
    y = y + b2_ref[...] + x_f32                                  # (tm, d_pad)

    # LayerNorm over the true feature width (eps = 1e-6).  Padded lanes of y are zero,
    # so plain sums over the padded width equal sums over d_in; one-pass variance.
    sum_y = jnp.sum(y, axis=-1, keepdims=True)
    sum_y2 = jnp.sum(y * y, axis=-1, keepdims=True)
    mean = sum_y * inv_d
    var = jnp.maximum(sum_y2 * inv_d - mean * mean, 0.0)
    y_norm = (y - mean) * jax.lax.rsqrt(var + 1e-6)
    o_ref[...] = (y_norm * gamma_ref[...] + beta_ref[...]).astype(o_ref.dtype)


def positionwise_feed_forward(x, w1, b1, w2, b2, gamma, beta, *, tm=256):
    """x: (B, S, d_in).  w1: (d_in, d_hid), w2: (d_hid, d_in) (transpose of nn.Linear.weight)."""
    B, S, d_in = x.shape
    d_hid = w1.shape[1]
    rows = B * S

    # Lane-dense padding (last dims -> multiple of 128) and adaptive row tiling
    # (single exact tile for small inputs, 256-row MXU-aligned tiles for large ones).
    d_pad = _round_up(d_in, 128)
    h_pad = _round_up(d_hid, 128)
    tm = max(8, min(tm, _round_up(rows, 8)))
    rows_pad = _round_up(rows, tm)

    f32 = jnp.float32
    bf16 = jnp.bfloat16
    x2 = jnp.zeros((rows_pad, d_pad), x.dtype).at[:rows, :d_in].set(
        x.reshape(rows, d_in))
    w1p = jnp.zeros((d_pad, h_pad), bf16).at[:d_in, :d_hid].set(w1.astype(bf16))
    w2p = jnp.zeros((h_pad, d_pad), bf16).at[:d_hid, :d_in].set(w2.astype(bf16))
    b1p = jnp.zeros((1, h_pad), f32).at[0, :d_hid].set(b1.astype(f32))
    b2p = jnp.zeros((1, d_pad), f32).at[0, :d_in].set(b2.astype(f32))
    gp = jnp.zeros((1, d_pad), f32).at[0, :d_in].set(gamma.astype(f32))
    bp = jnp.zeros((1, d_pad), f32).at[0, :d_in].set(beta.astype(f32))

    # VMEM budget: double-buffered x / out tiles (f32) + resident bf16 weights
    # (conservatively counted twice) + small vectors + headroom; cap at 64 MiB (v7x-safe).
    itemsize = jnp.dtype(x.dtype).itemsize
    needed = (2 * tm * d_pad * itemsize            # x tile (double-buffered)
              + 2 * tm * d_pad * itemsize          # out tile (double-buffered)
              + 2 * d_pad * h_pad * 2              # w1 (bf16)
              + 2 * h_pad * d_pad * 2              # w2 (bf16)
              + 8 * (h_pad + 3 * d_pad) * 4)       # biases / gamma / beta
    vmem_limit = min(max(2 * needed, 16 * 1024 * 1024), 64 * 1024 * 1024)

    kernel = functools.partial(ffn_kernel, inv_d=1.0 / float(d_in))

    out = pl.pallas_call(
        kernel,
        out_shape=jax.ShapeDtypeStruct((rows_pad, d_pad), x.dtype),
        grid_spec=pltpu.PrefetchScalarGridSpec(
            num_scalar_prefetch=0,
            grid=(rows_pad // tm,),
            in_specs=[
                pl.BlockSpec((tm, d_pad), lambda i: (i, 0)),      # x rows tile
                pl.BlockSpec((d_pad, h_pad), lambda i: (0, 0)),   # w1 (resident, bf16)
                pl.BlockSpec((1, h_pad), lambda i: (0, 0)),       # b1
                pl.BlockSpec((h_pad, d_pad), lambda i: (0, 0)),   # w2 (resident, bf16)
                pl.BlockSpec((1, d_pad), lambda i: (0, 0)),       # b2
                pl.BlockSpec((1, d_pad), lambda i: (0, 0)),       # gamma
                pl.BlockSpec((1, d_pad), lambda i: (0, 0)),       # beta
            ],
            out_specs=pl.BlockSpec((tm, d_pad), lambda i: (i, 0)),
        ),
        compiler_params=pltpu.CompilerParams(
            dimension_semantics=("parallel",),
            vmem_limit_bytes=vmem_limit,
        ),
    )(x2, w1p, b1p, w2p, b2p, gp, bp)

    return out[:rows, :d_in].reshape(B, S, d_in)


def reference(x, w1, b1, w2, b2, gamma, beta):
    """Pure-JAX f32 reference mirroring the PyTorch forward (eval mode)."""
    residual = x
    h = jnp.maximum(x @ w1 + b1, 0.0)
    y = h @ w2 + b2
    y = y + residual
    mean = jnp.mean(y, axis=-1, keepdims=True)
    var = jnp.mean((y - mean) ** 2, axis=-1, keepdims=True)
    y = (y - mean) / jnp.sqrt(var + 1e-6)
    return y * gamma + beta


if __name__ == "__main__":
    B, S, d_in, d_hid = 2, 8, 32, 64

    key = jax.random.PRNGKey(0)
    kx, k1, kb1, k2, kb2 = jax.random.split(key, 5)

    x = jax.random.normal(kx, (B, S, d_in), dtype=jnp.float32)

    # Deterministic parameter init (PyTorch-Linear-style uniform bounds).
    bound1 = 1.0 / (d_in ** 0.5)
    bound2 = 1.0 / (d_hid ** 0.5)
    w1 = jax.random.uniform(k1, (d_in, d_hid), jnp.float32, -bound1, bound1)
    b1 = jax.random.uniform(kb1, (d_hid,), jnp.float32, -bound1, bound1)
    w2 = jax.random.uniform(k2, (d_hid, d_in), jnp.float32, -bound2, bound2)
    b2 = jax.random.uniform(kb2, (d_in,), jnp.float32, -bound2, bound2)
    gamma = jnp.ones((d_in,), jnp.float32)   # nn.LayerNorm default weight
    beta = jnp.zeros((d_in,), jnp.float32)   # nn.LayerNorm default bias

    out = positionwise_feed_forward(x, w1, b1, w2, b2, gamma, beta)
    out = jax.block_until_ready(out)

    ref = reference(x, w1, b1, w2, b2, gamma, beta)
    assert out.shape == (B, S, d_in)
    # bf16 MXU operands (f32 accumulation) -> loosened tolerance vs the f32 reference.
    assert jnp.allclose(out, ref, atol=5e-2, rtol=5e-2), "mismatch vs reference"

    print("KERNEL_OK")
</pallas_src>

<mosaic_0001>
module attributes {stable_mosaic.version = 11 : i64} {
  func.func @ffn_kernel(%arg0: i32, %arg1: memref<16x128xf32, #tpu.memory_space<vmem>>, %arg2: memref<128x128xbf16, #tpu.memory_space<vmem>>, %arg3: memref<1x128xf32, #tpu.memory_space<vmem>>, %arg4: memref<128x128xbf16, #tpu.memory_space<vmem>>, %arg5: memref<1x128xf32, #tpu.memory_space<vmem>>, %arg6: memref<1x128xf32, #tpu.memory_space<vmem>>, %arg7: memref<1x128xf32, #tpu.memory_space<vmem>>, %arg8: memref<16x128xf32, #tpu.memory_space<vmem>>) attributes {dimension_semantics = [#tpu.dimension_semantics<parallel>], iteration_bounds = array<i64: 1>, scalar_prefetch = 0 : i64, scratch_operands = 0 : i64, tpu.core_type = #tpu.core_type<tc>, window_params = [{transform_indices = @transform_0, window_bounds = array<i64: 16, 128>}, {pipeline_mode = #tpu.pipeline_mode<synchronous>, transform_indices = @transform_1, window_bounds = array<i64: 128, 128>}, {pipeline_mode = #tpu.pipeline_mode<synchronous>, transform_indices = @transform_2, window_bounds = array<i64: 1, 128>}, {pipeline_mode = #tpu.pipeline_mode<synchronous>, transform_indices = @transform_3, window_bounds = array<i64: 128, 128>}, {pipeline_mode = #tpu.pipeline_mode<synchronous>, transform_indices = @transform_4, window_bounds = array<i64: 1, 128>}, {pipeline_mode = #tpu.pipeline_mode<synchronous>, transform_indices = @transform_5, window_bounds = array<i64: 1, 128>}, {pipeline_mode = #tpu.pipeline_mode<synchronous>, transform_indices = @transform_6, window_bounds = array<i64: 1, 128>}, {transform_indices = @transform_7, window_bounds = array<i64: 16, 128>}]} {
    %c0 = arith.constant 0 : index
    %c0_0 = arith.constant 0 : index
    %0 = vector.load %arg1[%c0, %c0_0] : memref<16x128xf32, #tpu.memory_space<vmem>>, vector<16x128xf32>
    %1 = arith.truncf %0 : vector<16x128xf32> to vector<16x128xbf16>
    %c0_1 = arith.constant 0 : index
    %c0_2 = arith.constant 0 : index
    %2 = vector.load %arg2[%c0_1, %c0_2] : memref<128x128xbf16, #tpu.memory_space<vmem>>, vector<128x128xbf16>
    %cst = arith.constant dense<0.000000e+00> : vector<16x128xf32>
    %3 = tpu.matmul %1, %2, %cst {dimension_numbers = #tpu.dot_dimension_numbers<[1], [0], [0], [1], [0, 0, 1, 1], [], []>} : vector<16x128xbf16>, vector<128x128xbf16>, vector<16x128xf32> -> vector<16x128xf32>
    %c0_3 = arith.constant 0 : index
    %c0_4 = arith.constant 0 : index
    %4 = vector.load %arg3[%c0_3, %c0_4] : memref<1x128xf32, #tpu.memory_space<vmem>>, vector<1x128xf32>
    %5 = vector.broadcast %4 : vector<1x128xf32> to vector<16x128xf32>
    %6 = arith.addf %3, %5 : vector<16x128xf32>
    %cst_5 = arith.constant 0.000000e+00 : f32
    %7 = vector.broadcast %cst_5 : f32 to vector<16x128xf32>
    %8 = arith.maximumf %6, %7 : vector<16x128xf32>
    %9 = arith.truncf %8 : vector<16x128xf32> to vector<16x128xbf16>
    %c0_6 = arith.constant 0 : index
    %c0_7 = arith.constant 0 : index
    %10 = vector.load %arg4[%c0_6, %c0_7] : memref<128x128xbf16, #tpu.memory_space<vmem>>, vector<128x128xbf16>
    %cst_8 = arith.constant dense<0.000000e+00> : vector<16x128xf32>
    %11 = tpu.matmul %9, %10, %cst_8 {dimension_numbers = #tpu.dot_dimension_numbers<[1], [0], [0], [1], [0, 0, 1, 1], [], []>} : vector<16x128xbf16>, vector<128x128xbf16>, vector<16x128xf32> -> vector<16x128xf32>
    %c0_9 = arith.constant 0 : index
    %c0_10 = arith.constant 0 : index
    %12 = vector.load %arg5[%c0_9, %c0_10] : memref<1x128xf32, #tpu.memory_space<vmem>>, vector<1x128xf32>
    %13 = vector.broadcast %12 : vector<1x128xf32> to vector<16x128xf32>
    %14 = arith.addf %11, %13 : vector<16x128xf32>
    %15 = arith.addf %14, %0 : vector<16x128xf32>
    %cst_11 = arith.constant dense<0.000000e+00> : vector<16xf32>
    %16 = vector.multi_reduction <add>, %15, %cst_11 [1] : vector<16x128xf32> to vector<16xf32>
    %17 = vector.shape_cast %16 : vector<16xf32> to vector<16x1xf32>
    %18 = arith.mulf %15, %15 : vector<16x128xf32>
    %cst_12 = arith.constant dense<0.000000e+00> : vector<16xf32>
    %19 = vector.multi_reduction <add>, %18, %cst_12 [1] : vector<16x128xf32> to vector<16xf32>
    %20 = vector.shape_cast %19 : vector<16xf32> to vector<16x1xf32>
    %cst_13 = arith.constant 3.125000e-02 : f32
    %21 = vector.broadcast %cst_13 : f32 to vector<16x1xf32>
    %22 = arith.mulf %17, %21 : vector<16x1xf32>
    %cst_14 = arith.constant 3.125000e-02 : f32
    %23 = vector.broadcast %cst_14 : f32 to vector<16x1xf32>
    %24 = arith.mulf %20, %23 : vector<16x1xf32>
    %25 = arith.mulf %22, %22 : vector<16x1xf32>
    %26 = arith.subf %24, %25 : vector<16x1xf32>
    %cst_15 = arith.constant 0.000000e+00 : f32
    %27 = vector.broadcast %cst_15 : f32 to vector<16x1xf32>
    %28 = arith.maximumf %26, %27 : vector<16x1xf32>
    %29 = vector.broadcast %22 : vector<16x1xf32> to vector<16x128xf32>
    %30 = arith.subf %15, %29 : vector<16x128xf32>
    %cst_16 = arith.constant 9.99999997E-7 : f32
    %31 = vector.broadcast %cst_16 : f32 to vector<16x1xf32>
    %32 = arith.addf %28, %31 : vector<16x1xf32>
    %33 = math.rsqrt %32 : vector<16x1xf32>
    %34 = vector.broadcast %33 : vector<16x1xf32> to vector<16x128xf32>
    %35 = arith.mulf %30, %34 : vector<16x128xf32>
    %c0_17 = arith.constant 0 : index
    %c0_18 = arith.constant 0 : index
    %36 = vector.load %arg6[%c0_17, %c0_18] : memref<1x128xf32, #tpu.memory_space<vmem>>, vector<1x128xf32>
    %37 = vector.broadcast %36 : vector<1x128xf32> to vector<16x128xf32>
    %38 = arith.mulf %35, %37 : vector<16x128xf32>
    %c0_19 = arith.constant 0 : index
    %c0_20 = arith.constant 0 : index
    %39 = vector.load %arg7[%c0_19, %c0_20] : memref<1x128xf32, #tpu.memory_space<vmem>>, vector<1x128xf32>
    %40 = vector.broadcast %39 : vector<1x128xf32> to vector<16x128xf32>
    %41 = arith.addf %38, %40 : vector<16x128xf32>
    %c0_21 = arith.constant 0 : index
    %c0_22 = arith.constant 0 : index
    %42 = vector.load %arg8[%c0_21, %c0_22] : memref<16x128xf32, #tpu.memory_space<vmem>>, vector<16x128xf32>
    tpu.vector_store %arg8[%c0_21, %c0_22], %41 {strides = array<i32>} : memref<16x128xf32, #tpu.memory_space<vmem>>, vector<16x128xf32>,
    return
  }
  func.func @transform_0(%arg0: i32) -> (i32, i32) {
    %c0_i32 = arith.constant 0 : i32
    %c0_i32_0 = arith.constant 0 : i32
    return %arg0, %c0_i32 : i32, i32
  }
  func.func @transform_1(%arg0: i32) -> (i32, i32) {
    %c0_i32 = arith.constant 0 : i32
    %c0_i32_0 = arith.constant 0 : i32
    %c0_i32_1 = arith.constant 0 : i32
    return %c0_i32, %c0_i32_0 : i32, i32
  }
  func.func @transform_2(%arg0: i32) -> (i32, i32) {
    %c0_i32 = arith.constant 0 : i32
    %c0_i32_0 = arith.constant 0 : i32
    %c0_i32_1 = arith.constant 0 : i32
    return %c0_i32, %c0_i32_0 : i32, i32
  }
  func.func @transform_3(%arg0: i32) -> (i32, i32) {
    %c0_i32 = arith.constant 0 : i32
    %c0_i32_0 = arith.constant 0 : i32
    %c0_i32_1 = arith.constant 0 : i32
    return %c0_i32, %c0_i32_0 : i32, i32
  }
  func.func @transform_4(%arg0: i32) -> (i32, i32) {
    %c0_i32 = arith.constant 0 : i32
    %c0_i32_0 = arith.constant 0 : i32
    %c0_i32_1 = arith.constant 0 : i32
    return %c0_i32, %c0_i32_0 : i32, i32
  }
  func.func @transform_5(%arg0: i32) -> (i32, i32) {
    %c0_i32 = arith.constant 0 : i32
    %c0_i32_0 = arith.constant 0 : i32
    %c0_i32_1 = arith.constant 0 : i32
    return %c0_i32, %c0_i32_0 : i32, i32
  }
  func.func @transform_6(%arg0: i32) -> (i32, i32) {
    %c0_i32 = arith.constant 0 : i32
    %c0_i32_0 = arith.constant 0 : i32
    %c0_i32_1 = arith.constant 0 : i32
    return %c0_i32, %c0_i32_0 : i32, i32
  }
  func.func @transform_7(%arg0: i32) -> (i32, i32) {
    %c0_i32 = arith.constant 0 : i32
    %c0_i32_0 = arith.constant 0 : i32
    return %arg0, %c0_i32 : i32, i32
  }
}

</mosaic_0001>

<bundles_post_ra>
// kernel: tpu_custom_call.1
= control target key start
LH: loop header
LB: loop body
LE: loop exit
PB: predicated region body
PF: predicated region fallthrough
CT: control target
= control target key end

     0   :  { %12 = vsyncpa [#allocation3], 0  ;;  %s691_s0 = inlined_call_operand.hbm [shape: f32[16,128], index: 0, kind: input, shape index: {}]   ;;  %s692_s1 = inlined_call_operand.hbm [shape: bf16[128,128], index: 1, kind: input, shape index: {}]   ;;  %s693_s2 = inlined_call_operand.vmem [shape: f32[1,128], index: 2, kind: input, shape index: {}]   ;;  %s694_s3 = inlined_call_operand.hbm [shape: bf16[128,128], index: 3, kind: input, shape index: {}]   ;;  %s695_s4 = inlined_call_operand.vmem [shape: f32[1,128], index: 4, kind: input, shape index: {}]   ;;  %s696_s5 = inlined_call_operand.vmem [shape: f32[1,128], index: 5, kind: input, shape index: {}]   ;;  %s697_s6 = inlined_call_operand.vmem [shape: f32[1,128], index: 6, kind: input, shape index: {}]   ;;  %s698_s7 = inlined_call_operand.hbm [shape: f32[16,128], index: 7, kind: output, shape index: {}]  }
   0x1   :  { %13 = vsyncpa [#allocation6], 0 }
   0x2   :  { %14 = vsyncpa [#allocation4], 0  ;;  %s569_s24 = smov [#allocation5]   ;;  %s475_s28 = scalar_lea.hbm %s692_s1, 1024 }
   0x3   :  { %s32_s25 = sshll.u32 %s569_s24, 4  ;;  %p476_p0 = scmp.ne.s32.totalorder %s692_s1, %s475_s28  ;;  %s33_s25 = int_to_ptr.vmem [resolvable:$true] %s32_s25 }
   0x4   :  { %p479_p1 = scmp.lt.u32.totalorder %s475_s28, %s692_s1 }
   0x6   :  { %p481_p2 = pnand %p479_p1, %p476_p0 }
   0x8   :  { %484 = shalt.err (!%p481_p2)
}
   0x9   :  { %s485_s10 = scalar_lea.vmem %s33_s25, 1024  ;;  %p490_p4 = scmp.lt.s32.totalorder %s33_s25, %s33_s25 }
   0xa   :  { %p486_p3 = scmp.ne.s32.totalorder %s33_s25, %s485_s10  ;;  %p491_p5 = scmp.lt.s32.totalorder %s485_s10, %s485_s10 }
   0xc   :  { %p492_p6 = por %p491_p5, %p490_p4 }
   0xe   :  { %p493_p7 = pnand %p492_p6, %p486_p3 }
  0x10   :  { %496 = shalt.err (!%p493_p7)
}
  0x11   :  { %s570_s11 = smov 64   ;;  %s571_s12 = smov 4  }
  0x12   :  { %38 = dma.hbm_to_vmem [thread:$0]  %s692_s1, 1024, %s33_s25, [#allocation6], %s570_s11, %s570_s11, %s571_s12  }
  0x13   :  { %s572_s15 = smov [#allocation2]   ;;  %s497_s19 = scalar_lea.hbm %s691_s0, 256 }
  0x14   :  { %s20_s16 = sshll.u32 %s572_s15, 4  ;;  %p498_p8 = scmp.ne.s32.totalorder %s691_s0, %s497_s19  ;;  %s21_s16 = int_to_ptr.vmem [resolvable:$true] %s20_s16 }
  0x15   :  { %p501_p9 = scmp.lt.u32.totalorder %s497_s19, %s691_s0 }
  0x17   :  { %p503_p10 = pnand %p501_p9, %p498_p8 }
  0x19   :  { %506 = shalt.err (!%p503_p10)
}
  0x1a   :  { %s507_s24 = scalar_lea.vmem %s21_s16, 256  ;;  %p512_p12 = scmp.lt.s32.totalorder %s21_s16, %s21_s16 }
  0x1b   :  { %p508_p11 = scmp.ne.s32.totalorder %s21_s16, %s507_s24  ;;  %p513_p13 = scmp.lt.s32.totalorder %s507_s24, %s507_s24 }
  0x1d   :  { %p514_p0 = por %p513_p13, %p512_p12 }
  0x1f   :  { %p515_p1 = pnand %p514_p0, %p508_p11 }
  0x21   :  { %518 = shalt.err (!%p515_p1)
}
  0x22   :  { %s573_s1 = smov 128   ;;  %s574_s25 = smov 8  }
  0x23   :  { %26 = dma.hbm_to_vmem [thread:$0]  %s691_s0, 256, %s21_s16, [#allocation3], %s573_s1, %s573_s1, %s574_s25  }
  0x24   :  { %s575_s28 = smov [#allocation7]   ;;  %s519_s9 = scalar_lea.hbm %s694_s3, 1024 }
  0x25   :  { %s46_s29 = sshll.u32 %s575_s28, 4  ;;  %p520_p2 = scmp.ne.s32.totalorder %s694_s3, %s519_s9  ;;  %s47_s29 = int_to_ptr.vmem [resolvable:$true] %s46_s29 }
  0x26   :  { %p523_p3 = scmp.lt.u32.totalorder %s519_s9, %s694_s3 }
  0x28   :  { %p525_p4 = pnand %p523_p3, %p520_p2 }
  0x2a   :  { %528 = shalt.err (!%p525_p4)
}
  0x2b   :  { %s529_s17 = scalar_lea.vmem %s47_s29, 1024  ;;  %p534_p6 = scmp.lt.s32.totalorder %s47_s29, %s47_s29 }
  0x2c   :  { %p530_p5 = scmp.ne.s32.totalorder %s47_s29, %s529_s17  ;;  %p535_p7 = scmp.lt.s32.totalorder %s529_s17, %s529_s17 }
  0x2e   :  { %p536_p8 = por %p535_p7, %p534_p6 }
  0x30   :  { %p537_p9 = pnand %p536_p8, %p530_p5 }
  0x32   :  { %540 = shalt.err (!%p537_p9)
}
  0x33   :  { %52 = dma.hbm_to_vmem [thread:$0]  %s694_s3, 1024, %s47_s29, [#allocation6], %s570_s11, %s570_s11, %s571_s12  }
  0x34   :  { %563 = dma.done.wait [#allocation3], 256  }
  0x35   :  { %564 = vsyncadd [#allocation3], 4294967040 }
  0x36   :  { %565 = dma.done.wait [#allocation6], 2048  }
  0x37   :  { %566 = vsyncadd [#allocation6], 4294965248  ;;  %v576_v0 = vmov 0.0   ;;  %vm577_vm0 = vmmov 0   ;;  %v455_v1 = vld [vmem:[#allocation5] sm:$0xff]   ;;  %v456_v2 = vld [vmem:[#allocation5 + $0x8] sm:$0xff]  }
  0x38   :  { %405 = vmatprep.subr.bf16.mxu0 %v576_v0  ;;  %421 = vmatprep.mubr.msk.bf16.mxu0 %vm577_vm0, %v576_v0  ;;  %v457_v3 = vld [vmem:[#allocation5 + $0x10] sm:$0xff]   ;;  %v463_v4 = vld [vmem:[#allocation7] sm:$0xff]   ;;  %v458_v5 = vld [vmem:[#allocation5 + $0x18] sm:$0xff]   ;;  %s578_s21 = smov [#allocation8]  }
  0x39   :  { %425 = vmatprep.subr.bf16.mxu1 %v576_v0  ;;  %441 = vmatprep.mubr.msk.bf16.mxu1 %vm577_vm0, %v576_v0  ;;  %v464_v6 = vld [vmem:[#allocation7 + $0x8] sm:$0xff]   ;;  %v459_v7 = vld [vmem:[#allocation5 + $0x20] sm:$0xff]   ;;  %v465_v8 = vld [vmem:[#allocation7 + $0x10] sm:$0xff]   ;;  %s354_s22 = sshll.u32 %s578_s21, 4  ;;  %s355_s22 = int_to_ptr.vmem [resolvable:$true] %s354_s22 }
  0x3a   :  { %406 = vmatpush3.bf16.msra.mxu0 %v455_v1  ;;  %426 = vmatpush3.bf16.msra.mxu1 %v463_v4  ;;  %v460_v9 = vld [vmem:[#allocation5 + $0x28] sm:$0xff]   ;;  %v466_v10 = vld [vmem:[#allocation7 + $0x18] sm:$0xff]   ;;  %v461_v11 = vld [vmem:[#allocation5 + $0x30] sm:$0xff]   ;;  %s541_s23 = scalar_lea.vmem %s355_s22, 256  ;;  %p546_p11 = scmp.lt.s32.totalorder %s355_s22, %s355_s22 }
  0x3b   :  { %407 = vmatprep.subr.bf16.mxu0 %v576_v0  ;;  %427 = vmatprep.subr.bf16.mxu1 %v576_v0  ;;  %v467_v12 = vld [vmem:[#allocation7 + $0x20] sm:$0xff]   ;;  %v462_v13 = vld [vmem:[#allocation5 + $0x38] sm:$0xff]   ;;  %v69_v14 = vld [vmem:[#allocation2] sm:$0xff]  ;;  %p542_p10 = scmp.ne.s32.totalorder %s355_s22, %s541_s23  ;;  %p547_p12 = scmp.lt.s32.totalorder %s541_s23, %s541_s23 }
  0x3c   :  { %v70_v15 = vld [vmem:[#allocation2 + $0x8] sm:$0xff]  ;;  %v468_v16 = vld [vmem:[#allocation7 + $0x28] sm:$0xff]   ;;  %v469_v18 = vld [vmem:[#allocation7 + $0x30] sm:$0xff]  }
  0x3d   :  { %v71_v17 = vpack.c.bf16 %v70_v15, %v69_v14  ;;  %v470_v19 = vld [vmem:[#allocation7 + $0x38] sm:$0xff]   ;;  %v367_v20 = vld [vmem:[%s693_s2] ss:$0 sm:$0xff]  ;;  %p548_p13 = por %p547_p12, %p546_p11 }
  0x3e   :  { %408 = vmatpush3.bf16.msra.mxu0 %v456_v2  ;;  %428 = vmatpush3.bf16.msra.mxu1 %v464_v6  ;;  %v376_v30 = vld [vmem:[%s695_s4] ss:$0 sm:$0xff] }
  0x3f   :  { %409 = vmatprep.subr.bf16.mxu0 %v576_v0  ;;  %429 = vmatprep.subr.bf16.mxu1 %v576_v0  ;;  %v385_v59 = vld [vmem:[%s696_s5] ss:$0 sm:$0xff]  ;;  %p549_p0 = pnand %p548_p13, %p542_p10 }
  0x40   :  { %v386_v61 = vld [vmem:[%s697_s6] ss:$0 sm:$0xff] }
  0x42   :  { %410 = vmatpush3.bf16.msra.mxu0 %v457_v3  ;;  %430 = vmatpush3.bf16.msra.mxu1 %v465_v8 }
  0x43   :  { %411 = vmatprep.subr.bf16.mxu0 %v576_v0  ;;  %431 = vmatprep.subr.bf16.mxu1 %v576_v0 }
  0x46   :  { %412 = vmatpush3.bf16.msra.mxu0 %v458_v5  ;;  %432 = vmatpush3.bf16.msra.mxu1 %v466_v10 }
  0x47   :  { %413 = vmatprep.subr.bf16.mxu0 %v576_v0  ;;  %433 = vmatprep.subr.bf16.mxu1 %v576_v0 }
  0x4a   :  { %414 = vmatpush3.bf16.msra.mxu0 %v459_v7  ;;  %434 = vmatpush3.bf16.msra.mxu1 %v467_v12 }
  0x4b   :  { %415 = vmatprep.subr.bf16.mxu0 %v576_v0  ;;  %435 = vmatprep.subr.bf16.mxu1 %v576_v0 }
  0x4e   :  { %416 = vmatpush3.bf16.msra.mxu0 %v460_v9  ;;  %436 = vmatpush3.bf16.msra.mxu1 %v468_v16 }
  0x4f   :  { %417 = vmatprep.subr.bf16.mxu0 %v576_v0  ;;  %437 = vmatprep.subr.bf16.mxu1 %v576_v0 }
  0x52   :  { %418 = vmatpush3.bf16.msra.mxu0 %v461_v11  ;;  %438 = vmatpush3.bf16.msra.mxu1 %v469_v18 }
  0x53   :  { %419 = vmatprep.subr.bf16.mxu0 %v576_v0  ;;  %439 = vmatprep.subr.bf16.mxu1 %v576_v0 }
  0x56   :  { %420 = vmatpush3.bf16.msra.mxu0 %v462_v13  ;;  %440 = vmatpush3.bf16.msra.mxu1 %v470_v19 }
  0x59   :  { %422 = vmatmul.mubr.bf16.vlgmr.msra.gmra.mrb[0].mxu0 %v71_v17 }
 0x12c   :  { %v177_v21 = vpop.f32.mrb[0].mxu0 }
 0x12d   :  { %v178_v22 = vadd.f32 %v367_v20, %v177_v21  ;;  %v423_v23 = vpop.f32.mrb[1].mxu0 }
 0x12e   :  { %v180_v24 = vpop.f32.mrb[2].mxu0 }
 0x12f   :  { %v181_v25 = vadd.f32 %v367_v20, %v180_v24  ;;  %v424_v26 = vpop.f32.mrb[3].mxu0  ;;  %v184_v27 = vmax.f32 %v178_v22, 0.0 }
 0x131   :  { %v185_v28 = vmax.f32 %v181_v25, 0.0 }
 0x133   :  { %v186_v29 = vpack.c.bf16 %v185_v28, %v184_v27 }
 0x135   :  { %442 = vmatmul.mubr.bf16.vlgmr.msra.gmra.mrb[0].mxu1 %v186_v29 }
 0x208   :  { %v292_v31 = vpop.f32.mrb[0].mxu1 }
 0x209   :  { %v293_v32 = vadd.f32 %v376_v30, %v292_v31  ;;  %v443_v33 = vpop.f32.mrb[1].mxu1 }
 0x20a   :  { %v295_v34 = vpop.f32.mrb[2].mxu1 }
 0x20b   :  { %v299_v35 = vadd.f32 %v293_v32, %v69_v14  ;;  %v296_v36 = vadd.f32 %v376_v30, %v295_v34  ;;  %v444_v37 = vpop.f32.mrb[3].mxu1 }
 0x20d   :  { %v300_v38 = vadd.f32 %v296_v36, %v70_v15  ;;  %301 = vadd.xlane.f32.xlu0 %v299_v35  ;;  %v305_v39 = vmul.f32 %v299_v35, %v299_v35 }
 0x20f   :  { %307 = vadd.xlane.f32.xlu1 %v305_v39  ;;  %v306_v40 = vmul.f32 %v300_v38, %v300_v38 }
 0x211   :  { %303 = vadd.xlane.f32.xlu0 %v300_v38 }
 0x213   :  { %309 = vadd.xlane.f32.xlu1 %v306_v40 }
 0x29a   :  { %v302_v41 = vpop.xlane.xlu0 %301 }
 0x29b   :  { %v311_v42 = vmul.f32 0.03125, %v302_v41 }
 0x29c   :  { %v308_v43 = vpop.xlane.xlu1 %307 }
 0x29d   :  { %v315_v44 = vmul.f32 %v311_v42, %v311_v42  ;;  %v313_v45 = vmul.f32 0.03125, %v308_v43  ;;  %v321_v57 = vsub.f32 %v299_v35, %v311_v42 }
 0x29e   :  { %v304_v46 = vpop.xlane.xlu0 %303 }
 0x29f   :  { %v317_v47 = vsub.f32 %v313_v45, %v315_v44  ;;  %v312_v48 = vmul.f32 0.03125, %v304_v46 }
 0x2a0   :  { %v310_v49 = vpop.xlane.xlu1 %309 }
 0x2a1   :  { %v319_v50 = vmax.f32 %v317_v47, 0.0  ;;  %v316_v51 = vmul.f32 %v312_v48, %v312_v48  ;;  %v314_v52 = vmul.f32 0.03125, %v310_v49  ;;  %v322_v62 = vsub.f32 %v300_v38, %v312_v48 }
 0x2a3   :  { %v323_v53 = vadd.f32 1e-06, %v319_v50  ;;  %v318_v54 = vsub.f32 %v314_v52, %v316_v51 }
 0x2a5   :  { %471 = vrsqrt.f32 %v323_v53  ;;  %v320_v55 = vmax.f32 %v318_v54, 0.0 }
 0x2a7   :  { %v324_v56 = vadd.f32 1e-06, %v320_v55 }
 0x2a9   :  { %473 = vrsqrt.f32 %v324_v56 }
 0x2af   :  { %v472_v58 = vpop.eup %471 }
 0x2b0   :  { %v327_v60 = vmul.f32 %v472_v58, %v321_v57 }
 0x2b2   :  { %v336_v63 = vmul.f32 %v385_v59, %v327_v60 }
 0x2b3   :  { %v474_v0 = vpop.eup %473 }
 0x2b4   :  { %v328_v1 = vmul.f32 %v474_v0, %v322_v62  ;;  %v345_v2 = vadd.f32 %v386_v61, %v336_v63 }
 0x2b6   :  { %v337_v3 = vmul.f32 %v385_v59, %v328_v1  ;;  %347 = vst [vmem:[#allocation8] sm:$0xff] %v345_v2 }
 0x2b8   :  { %v346_v4 = vadd.f32 %v386_v61, %v337_v3 }
 0x2ba   :  { %348 = vst [vmem:[#allocation8 + $0x8] sm:$0xff] %v346_v4 }
 0x2bb   :  { %552 = shalt.err (!%p549_p0)
}
 0x2bc   :  { %s553_s24 = scalar_lea.hbm %s698_s7, 256 }
 0x2bd   :  { %p554_p1 = scmp.ne.s32.totalorder %s698_s7, %s553_s24  ;;  %p557_p2 = scmp.lt.u32.totalorder %s553_s24, %s698_s7 }
 0x2bf   :  { %p559_p3 = pnand %p557_p2, %p554_p1 }
 0x2c1   :  { %562 = shalt.err (!%p559_p3)
}
 0x2c2   :  { %360 = dma.vmem_to_hbm [thread:$0]  %s355_s22, 256, %s698_s7, [#allocation4], %s573_s1, %s573_s1, %s574_s25  }
 0x2c3   :  { %567 = dma.done.wait [#allocation4], 256  }
 0x2c4   :  { %568 = vsyncadd [#allocation4], 4294967040 }
 0x2c5   :  { %364 = vsyncpa [#allocation3], 1 }
 0x2c6   :  { %365 = vsyncpa [#allocation6], 1 }
 0x2c7   :  { %366 = vsyncpa [#allocation4], 1 }

</bundles_post_ra>
